<compile_context>
chip_gen: v6e
topology: v6e:2x2x1
jax: 0.10.0
libtpu: 0.0.40
codegen_flags: <defaults>
</compile_context>

<pallas_src>
import functools

import jax
import jax.numpy as jnp
from jax.experimental import pallas as pl
from jax.experimental.pallas import tpu as pltpu


# ----------------------------------------------------------------------------
# Chip-generation-aware defaults (best effort; conservative fallbacks).
# ----------------------------------------------------------------------------
@functools.lru_cache(maxsize=1)
def _tpu_config():
    kind = ""
    try:
        kind = (jax.devices()[0].device_kind or "").lower()
    except Exception:
        pass
    vmem_phys = None
    try:
        vmem_phys = int(pltpu.get_tpu_info().vmem_capacity_bytes)
    except Exception:
        vmem_phys = None
    if not vmem_phys:
        vmem_phys = 64 * 1024 * 1024            # conservative (v7x-sized)
    # bf16 VPU exists on v6e/v7x; v5e (and unknown chips) stay f32.
    bf16_default = ("v6" in kind) or ("v7" in kind)
    # v7x (and v4 megacore) expose 2 TensorCores per chip -> keep the
    # "parallel" grid at >= 8 steps so neither core idles.
    two_tensorcores = ("v7" in kind) or ("v4" in kind)
    vmem_limit = max(16 * 1024 * 1024, min(vmem_phys // 2, 64 * 1024 * 1024))
    return {
        "bf16_default": bf16_default,
        "min_grid_steps": 8 if two_tensorcores else 1,
        "vmem_limit_bytes": vmem_limit,
    }


def _round_up(x, n):
    return -(-x // n) * n


def _choose_tile(m, point_tile, min_grid_steps, vmem_budget, widths,
                 compute_bytes, out_bytes):
    """Pick the point tile: large (amortize grid-step overhead), a multiple of
    256, within a conservative VMEM budget, and with >= min_grid_steps grid
    steps on 2-TensorCore chips.  Returns m itself (a single full-extent
    block) for small inputs."""
    # Per-point VMEM estimate: double-buffered streamed input + output, plus
    # f32 per-layer intermediates inside the kernel.
    per_point = (2 * widths[0] * compute_bytes
                 + 2 * widths[-1] * out_bytes
                 + sum(widths[1:]) * 4)
    cap = max(256, (vmem_budget // per_point) // 256 * 256)
    tile = max(256, min((point_tile // 256) * 256, cap))
    if min_grid_steps > 1:
        tile = min(tile, max(256, _round_up(pl.cdiv(m, min_grid_steps), 256)))
    if m <= tile:
        return m                                # single full-extent block
    return tile


# ----------------------------------------------------------------------------
# Pallas kernel: full MLP forward (all linears + ReLUs fused)
# ----------------------------------------------------------------------------
def _make_mlp_kernel(num_layers: int, outermost_linear: bool, compute_dtype,
                     precision):
    def kernel(x_ref, *refs):
        # refs layout: w0, b0, w1, b1, ..., w_{L-1}, b_{L-1}, o_ref
        o_ref = refs[-1]
        h = x_ref[...]                                   # (K0, P), compute dtype
        for layer in range(num_layers):
            w = refs[2 * layer][...]                     # (N_l, K_l) compute dtype
            b = refs[2 * layer + 1][...]                 # (N_l, 1)   f32
            # MXU matmul with f32 accumulation; bias folded into f32 epilogue.
            # TODO(synk): verify with a bundle dump that the (K,P) activation
            # chunk is the MXU-stationary operand (expected vmatmul count
            # ~ num_layers * (N/8) * ceil(tile/256) per step on v6e/v7x).
            acc = jnp.dot(w, h, preferred_element_type=jnp.float32,
                          precision=precision) + b
            # FCBlock default: ReLU after every layer, including the last one,
            # unless outermost_linear=True.
            if layer < num_layers - 1 or not outermost_linear:
                acc = jnp.maximum(acc, 0.0)
            # Feed the next MXU matmul in compute_dtype (bf16 on v6e/v7x).
            h = acc if layer == num_layers - 1 else acc.astype(compute_dtype)
        o_ref[...] = h.astype(o_ref.dtype)               # lane-dense (N_out, P) store

    return kernel


def fc_block_forward(coords, weights, biases, *, outermost_linear=False,
                     point_tile=4096, compute_dtype=None, precision=None):
    """Fused FCBlock MLP forward.

    coords : (..., in_features)                 (PyTorch layout)
    weights: list of (out_l, in_l) arrays       (PyTorch nn.Linear layout)
    biases : list of (out_l,) arrays
    compute_dtype: None -> bf16 on v6e/v7x, f32 elsewhere.
    precision:     None -> HIGHEST (true f32) for the f32 path, DEFAULT
                   (single MXU pass) for the bf16 path.
    """
    cfg = _tpu_config()
    num_layers = len(weights)
    in_features = weights[0].shape[1]
    out_features = weights[-1].shape[0]
    widths = [in_features] + [w.shape[0] for w in weights]

    if compute_dtype is None:
        compute_dtype = jnp.bfloat16 if cfg["bf16_default"] else jnp.float32
    compute_dtype = jnp.dtype(compute_dtype)
    if precision is None:
        precision = (jax.lax.Precision.DEFAULT
                     if compute_dtype == jnp.dtype(jnp.bfloat16)
                     else jax.lax.Precision.HIGHEST)

    lead_shape = coords.shape[:-1]
    x2d = coords.reshape(-1, in_features)
    m = x2d.shape[0]
    # TODO(synk): this transpose (and the output one below) are extra strided
    # HBM passes at very large M; fuse them into the coord producer / result
    # consumer upstream if they show up when summing all XLA ops in the trace.
    x_t = x2d.T.astype(compute_dtype)            # (K0, M): points on lane axis

    out_dtype = coords.dtype
    tile = _choose_tile(
        m, point_tile, cfg["min_grid_steps"], cfg["vmem_limit_bytes"] // 2,
        widths, compute_dtype.itemsize, jnp.dtype(out_dtype).itemsize)
    grid = (pl.cdiv(m, tile),)                   # ragged last block is masked

    # Input block walks along the lane (point) axis.
    in_specs = [pl.BlockSpec((in_features, tile), lambda i: (0, i))]
    args = [x_t]
    # Weights/biases: constant index_map -> DMA'd once, resident in VMEM.
    for w, b in zip(weights, biases):
        n_l, k_l = w.shape
        in_specs.append(pl.BlockSpec((n_l, k_l), lambda i: (0, 0)))
        in_specs.append(pl.BlockSpec((n_l, 1), lambda i: (0, 0)))
        args.append(w.astype(compute_dtype))     # bf16 halves weight VMEM on v6e/v7x
        args.append(b.reshape(n_l, 1).astype(jnp.float32))

    # Output block (out_features, tile): point axis on lanes -> unmasked,
    # lane-dense stores even though out_features is tiny.
    out_spec = pl.BlockSpec((out_features, tile), lambda i: (0, i))

    kernel = _make_mlp_kernel(num_layers, outermost_linear, compute_dtype,
                              precision)

    out_t = pl.pallas_call(
        kernel,
        out_shape=jax.ShapeDtypeStruct((out_features, m), out_dtype),
        grid_spec=pltpu.PrefetchScalarGridSpec(
            num_scalar_prefetch=0,
            grid=grid,
            in_specs=in_specs,
            out_specs=out_spec,
        ),
        compiler_params=pltpu.CompilerParams(
            # Point tiles are independent -> megacore / dual-TC sharding.
            dimension_semantics=("parallel",),
            vmem_limit_bytes=cfg["vmem_limit_bytes"],
        ),
    )(*args)

    return out_t.T.reshape(*lead_shape, out_features)


# ----------------------------------------------------------------------------
# Deterministic parameter init (mirrors FCBlock with nonlinearity='relu':
# kaiming_normal fan_out for weights, default nn.Linear uniform for biases).
# Weights are kept in PyTorch (out, in) layout.
# ----------------------------------------------------------------------------
def init_fc_block_params(key, in_features, out_features, num_hidden_layers,
                         hidden_features):
    dims = ([in_features] + [hidden_features] * (num_hidden_layers + 1)
            + [out_features])
    weights, biases = [], []
    for i in range(len(dims) - 1):
        fan_in, fan_out = dims[i], dims[i + 1]
        key, kw, kb = jax.random.split(key, 3)
        std = (2.0 / fan_out) ** 0.5             # kaiming_normal fan_out, relu
        w = std * jax.random.normal(kw, (fan_out, fan_in), dtype=jnp.float32)
        bound = 1.0 / (fan_in ** 0.5)
        b = jax.random.uniform(kb, (fan_out,), dtype=jnp.float32,
                               minval=-bound, maxval=bound)
        weights.append(w)
        biases.append(b)
    return weights, biases


# Pure-JAX reference (high precision) for correctness checking.
def fc_block_reference(coords, weights, biases, outermost_linear=False):
    h = coords
    n = len(weights)
    for i, (w, b) in enumerate(zip(weights, biases)):
        h = jnp.matmul(h, w.T, precision=jax.lax.Precision.HIGHEST) + b
        if i < n - 1 or not outermost_linear:
            h = jnp.maximum(h, 0.0)
    return h


if __name__ == "__main__":
    # Module config (FCBlock defaults, small feature widths):
    in_features = 3
    out_features = 4
    num_hidden_layers = 2
    hidden_features = 32
    outermost_linear = False   # default -> ReLU on the last layer too

    key = jax.random.PRNGKey(0)
    key, kx, kx2 = jax.random.split(key, 3)
    weights, biases = init_fc_block_params(
        key, in_features, out_features, num_hidden_layers, hidden_features)

    # --- Test 1: small spec shape, explicit f32 path (HIGHEST precision) -----
    coords = jax.random.normal(kx, (2, 8, in_features), dtype=jnp.float32)
    out = fc_block_forward(coords, weights, biases,
                           outermost_linear=outermost_linear,
                           compute_dtype=jnp.float32)
    out = jax.block_until_ready(out)
    ref = fc_block_reference(coords, weights, biases, outermost_linear)
    assert out.shape == (2, 8, out_features)
    assert jnp.allclose(out, ref, atol=1e-4, rtol=1e-4), "small f32 mismatch"

    # --- Test 2: multi-step grid with a ragged (masked) last block, f32 ------
    coords_med = jax.random.normal(kx2, (3, 1500, in_features),
                                   dtype=jnp.float32)        # M = 4500
    out_med = fc_block_forward(coords_med, weights, biases,
                               outermost_linear=outermost_linear,
                               point_tile=1024,              # force several steps
                               compute_dtype=jnp.float32)
    out_med = jax.block_until_ready(out_med)
    ref_med = fc_block_reference(coords_med, weights, biases, outermost_linear)
    assert out_med.shape == (3, 1500, out_features)
    assert jnp.allclose(out_med, ref_med, atol=1e-3, rtol=1e-3), \
        "ragged-tiled f32 mismatch"

    # --- Test 3: generation-aware defaults (bf16 on v6e/v7x, f32 elsewhere),
    #             large default tile ------------------------------------------
    out_auto = fc_block_forward(coords_med, weights, biases,
                                outermost_linear=outermost_linear)
    out_auto = jax.block_until_ready(out_auto)
    assert out_auto.shape == (3, 1500, out_features)
    assert jnp.allclose(out_auto.astype(jnp.float32), ref_med,
                        atol=0.2, rtol=0.1), "auto-dtype path mismatch"

    # TODO(synk): skip_connect / dropout / layer_norm / non-relu nonlinearity
    # branches of FCBlock are not exercised by the default config and are not
    # implemented here.
    print("KERNEL_OK")
</pallas_src>

<mosaic_0001>
module attributes {stable_mosaic.version = 11 : i64} {
  func.func @kernel(%arg0: i32, %arg1: memref<3x16xf32, #tpu.memory_space<vmem>>, %arg2: memref<32x3xf32, #tpu.memory_space<vmem>>, %arg3: memref<32x1xf32, #tpu.memory_space<vmem>>, %arg4: memref<32x32xf32, #tpu.memory_space<vmem>>, %arg5: memref<32x1xf32, #tpu.memory_space<vmem>>, %arg6: memref<32x32xf32, #tpu.memory_space<vmem>>, %arg7: memref<32x1xf32, #tpu.memory_space<vmem>>, %arg8: memref<4x32xf32, #tpu.memory_space<vmem>>, %arg9: memref<4x1xf32, #tpu.memory_space<vmem>>, %arg10: memref<4x16xf32, #tpu.memory_space<vmem>>) attributes {dimension_semantics = [#tpu.dimension_semantics<parallel>], iteration_bounds = array<i64: 1>, scalar_prefetch = 0 : i64, scratch_operands = 0 : i64, tpu.core_type = #tpu.core_type<tc>, window_params = [{transform_indices = @transform_0, window_bounds = array<i64: 3, 16>}, {pipeline_mode = #tpu.pipeline_mode<synchronous>, transform_indices = @transform_1, window_bounds = array<i64: 32, 3>}, {pipeline_mode = #tpu.pipeline_mode<synchronous>, transform_indices = @transform_2, window_bounds = array<i64: 32, 1>}, {pipeline_mode = #tpu.pipeline_mode<synchronous>, transform_indices = @transform_3, window_bounds = array<i64: 32, 32>}, {pipeline_mode = #tpu.pipeline_mode<synchronous>, transform_indices = @transform_4, window_bounds = array<i64: 32, 1>}, {pipeline_mode = #tpu.pipeline_mode<synchronous>, transform_indices = @transform_5, window_bounds = array<i64: 32, 32>}, {pipeline_mode = #tpu.pipeline_mode<synchronous>, transform_indices = @transform_6, window_bounds = array<i64: 32, 1>}, {pipeline_mode = #tpu.pipeline_mode<synchronous>, transform_indices = @transform_7, window_bounds = array<i64: 4, 32>}, {pipeline_mode = #tpu.pipeline_mode<synchronous>, transform_indices = @transform_8, window_bounds = array<i64: 4, 1>}, {transform_indices = @transform_9, window_bounds = array<i64: 4, 16>}]} {
    %c0 = arith.constant 0 : index
    %c0_0 = arith.constant 0 : index
    %0 = vector.load %arg1[%c0, %c0_0] : memref<3x16xf32, #tpu.memory_space<vmem>>, vector<3x16xf32>
    %c0_1 = arith.constant 0 : index
    %c0_2 = arith.constant 0 : index
    %1 = vector.load %arg2[%c0_1, %c0_2] : memref<32x3xf32, #tpu.memory_space<vmem>>, vector<32x3xf32>
    %c0_3 = arith.constant 0 : index
    %c0_4 = arith.constant 0 : index
    %2 = vector.load %arg3[%c0_3, %c0_4] : memref<32x1xf32, #tpu.memory_space<vmem>>, vector<32x1xf32>
    %cst = arith.constant dense<0.000000e+00> : vector<32x16xf32>
    %3 = tpu.matmul %1, %0, %cst {dimension_numbers = #tpu.dot_dimension_numbers<[1], [0], [0], [1], [0, 0, 1, 1], [], []>, precision = #tpu.contract_precision<fp32>} : vector<32x3xf32>, vector<3x16xf32>, vector<32x16xf32> -> vector<32x16xf32>
    %4 = vector.broadcast %2 : vector<32x1xf32> to vector<32x16xf32>
    %5 = arith.addf %3, %4 : vector<32x16xf32>
    %cst_5 = arith.constant 0.000000e+00 : f32
    %6 = vector.broadcast %cst_5 : f32 to vector<32x16xf32>
    %7 = arith.maximumf %5, %6 : vector<32x16xf32>
    %c0_6 = arith.constant 0 : index
    %c0_7 = arith.constant 0 : index
    %8 = vector.load %arg4[%c0_6, %c0_7] : memref<32x32xf32, #tpu.memory_space<vmem>>, vector<32x32xf32>
    %c0_8 = arith.constant 0 : index
    %c0_9 = arith.constant 0 : index
    %9 = vector.load %arg5[%c0_8, %c0_9] : memref<32x1xf32, #tpu.memory_space<vmem>>, vector<32x1xf32>
    %cst_10 = arith.constant dense<0.000000e+00> : vector<32x16xf32>
    %10 = tpu.matmul %8, %7, %cst_10 {dimension_numbers = #tpu.dot_dimension_numbers<[1], [0], [0], [1], [0, 0, 1, 1], [], []>, precision = #tpu.contract_precision<fp32>} : vector<32x32xf32>, vector<32x16xf32>, vector<32x16xf32> -> vector<32x16xf32>
    %11 = vector.broadcast %9 : vector<32x1xf32> to vector<32x16xf32>
    %12 = arith.addf %10, %11 : vector<32x16xf32>
    %cst_11 = arith.constant 0.000000e+00 : f32
    %13 = vector.broadcast %cst_11 : f32 to vector<32x16xf32>
    %14 = arith.maximumf %12, %13 : vector<32x16xf32>
    %c0_12 = arith.constant 0 : index
    %c0_13 = arith.constant 0 : index
    %15 = vector.load %arg6[%c0_12, %c0_13] : memref<32x32xf32, #tpu.memory_space<vmem>>, vector<32x32xf32>
    %c0_14 = arith.constant 0 : index
    %c0_15 = arith.constant 0 : index
    %16 = vector.load %arg7[%c0_14, %c0_15] : memref<32x1xf32, #tpu.memory_space<vmem>>, vector<32x1xf32>
    %cst_16 = arith.constant dense<0.000000e+00> : vector<32x16xf32>
    %17 = tpu.matmul %15, %14, %cst_16 {dimension_numbers = #tpu.dot_dimension_numbers<[1], [0], [0], [1], [0, 0, 1, 1], [], []>, precision = #tpu.contract_precision<fp32>} : vector<32x32xf32>, vector<32x16xf32>, vector<32x16xf32> -> vector<32x16xf32>
    %18 = vector.broadcast %16 : vector<32x1xf32> to vector<32x16xf32>
    %19 = arith.addf %17, %18 : vector<32x16xf32>
    %cst_17 = arith.constant 0.000000e+00 : f32
    %20 = vector.broadcast %cst_17 : f32 to vector<32x16xf32>
    %21 = arith.maximumf %19, %20 : vector<32x16xf32>
    %c0_18 = arith.constant 0 : index
    %c0_19 = arith.constant 0 : index
    %22 = vector.load %arg8[%c0_18, %c0_19] : memref<4x32xf32, #tpu.memory_space<vmem>>, vector<4x32xf32>
    %c0_20 = arith.constant 0 : index
    %c0_21 = arith.constant 0 : index
    %23 = vector.load %arg9[%c0_20, %c0_21] : memref<4x1xf32, #tpu.memory_space<vmem>>, vector<4x1xf32>
    %cst_22 = arith.constant dense<0.000000e+00> : vector<4x16xf32>
    %24 = tpu.matmul %22, %21, %cst_22 {dimension_numbers = #tpu.dot_dimension_numbers<[1], [0], [0], [1], [0, 0, 1, 1], [], []>, precision = #tpu.contract_precision<fp32>} : vector<4x32xf32>, vector<32x16xf32>, vector<4x16xf32> -> vector<4x16xf32>
    %25 = vector.broadcast %23 : vector<4x1xf32> to vector<4x16xf32>
    %26 = arith.addf %24, %25 : vector<4x16xf32>
    %cst_23 = arith.constant 0.000000e+00 : f32
    %27 = vector.broadcast %cst_23 : f32 to vector<4x16xf32>
    %28 = arith.maximumf %26, %27 : vector<4x16xf32>
    %c0_24 = arith.constant 0 : index
    %c0_25 = arith.constant 0 : index
    %29 = vector.load %arg10[%c0_24, %c0_25] : memref<4x16xf32, #tpu.memory_space<vmem>>, vector<4x16xf32>
    tpu.vector_store %arg10[%c0_24, %c0_25], %28 {strides = array<i32>} : memref<4x16xf32, #tpu.memory_space<vmem>>, vector<4x16xf32>,
    return
  }
  func.func @transform_0(%arg0: i32) -> (i32, i32) {
    %c0_i32 = arith.constant 0 : i32
    %c0_i32_0 = arith.constant 0 : i32
    return %c0_i32, %arg0 : i32, i32
  }
  func.func @transform_1(%arg0: i32) -> (i32, i32) {
    %c0_i32 = arith.constant 0 : i32
    %c0_i32_0 = arith.constant 0 : i32
    %c0_i32_1 = arith.constant 0 : i32
    return %c0_i32, %c0_i32_0 : i32, i32
  }
  func.func @transform_2(%arg0: i32) -> (i32, i32) {
    %c0_i32 = arith.constant 0 : i32
    %c0_i32_0 = arith.constant 0 : i32
    %c0_i32_1 = arith.constant 0 : i32
    return %c0_i32, %c0_i32_0 : i32, i32
  }
  func.func @transform_3(%arg0: i32) -> (i32, i32) {
    %c0_i32 = arith.constant 0 : i32
    %c0_i32_0 = arith.constant 0 : i32
    %c0_i32_1 = arith.constant 0 : i32
    return %c0_i32, %c0_i32_0 : i32, i32
  }
  func.func @transform_4(%arg0: i32) -> (i32, i32) {
    %c0_i32 = arith.constant 0 : i32
    %c0_i32_0 = arith.constant 0 : i32
    %c0_i32_1 = arith.constant 0 : i32
    return %c0_i32, %c0_i32_0 : i32, i32
  }
  func.func @transform_5(%arg0: i32) -> (i32, i32) {
    %c0_i32 = arith.constant 0 : i32
    %c0_i32_0 = arith.constant 0 : i32
    %c0_i32_1 = arith.constant 0 : i32
    return %c0_i32, %c0_i32_0 : i32, i32
  }
  func.func @transform_6(%arg0: i32) -> (i32, i32) {
    %c0_i32 = arith.constant 0 : i32
    %c0_i32_0 = arith.constant 0 : i32
    %c0_i32_1 = arith.constant 0 : i32
    return %c0_i32, %c0_i32_0 : i32, i32
  }
  func.func @transform_7(%arg0: i32) -> (i32, i32) {
    %c0_i32 = arith.constant 0 : i32
    %c0_i32_0 = arith.constant 0 : i32
    %c0_i32_1 = arith.constant 0 : i32
    return %c0_i32, %c0_i32_0 : i32, i32
  }
  func.func @transform_8(%arg0: i32) -> (i32, i32) {
    %c0_i32 = arith.constant 0 : i32
    %c0_i32_0 = arith.constant 0 : i32
    %c0_i32_1 = arith.constant 0 : i32
    return %c0_i32, %c0_i32_0 : i32, i32
  }
  func.func @transform_9(%arg0: i32) -> (i32, i32) {
    %c0_i32 = arith.constant 0 : i32
    %c0_i32_0 = arith.constant 0 : i32
    return %c0_i32, %arg0 : i32, i32
  }
}

</mosaic_0001>

<bundles_post_ra>
// kernel: tpu_custom_call.1
= control target key start
LH: loop header
LB: loop body
LE: loop exit
PB: predicated region body
PF: predicated region fallthrough
CT: control target
= control target key end

     0   :  { %vm75_vm0 = vcmask 1042432   ;;  %vm62_vm1 = vcmask 23552   ;;  %v2953_v12 = vmov 0   ;;  %s3404_s0 = inlined_call_operand.vmem [shape: f32[3,16], index: 0, kind: input, shape index: {}]   ;;  %s3405_s1 = inlined_call_operand.vmem [shape: f32[32,3], index: 1, kind: input, shape index: {}]   ;;  %s3406_s2 = inlined_call_operand.vmem [shape: f32[32,1], index: 2, kind: input, shape index: {}]   ;;  %s3407_s3 = inlined_call_operand.vmem [shape: f32[32,32], index: 3, kind: input, shape index: {}]   ;;  %s3408_s4 = inlined_call_operand.vmem [shape: f32[32,1], index: 4, kind: input, shape index: {}]   ;;  %s3409_s5 = inlined_call_operand.vmem [shape: f32[32,32], index: 5, kind: input, shape index: {}]   ;;  %s3410_s6 = inlined_call_operand.vmem [shape: f32[32,1], index: 6, kind: input, shape index: {}]   ;;  %s3411_s7 = inlined_call_operand.vmem [shape: f32[4,32], index: 7, kind: input, shape index: {}]   ;;  %s3412_s8 = inlined_call_operand.vmem [shape: f32[4,1], index: 8, kind: input, shape index: {}]   ;;  %s3413_s9 = inlined_call_operand.hbm [shape: f32[4,16], index: 9, kind: output, shape index: {}]  }
   0x1   :  { %v33_v0 = vld [vmem:[%s3404_s0] sm:$0x7]  ;;  %v35_v2 = vld [vmem:[%s3405_s1 + $0x8] sm:$0xff]  ;;  %v36_v6 = vld [vmem:[%s3405_s1 + $0x10] sm:$0xff]  ;;  %2929 = vset.pattern.permute.xlu0 %v2953_v12  ;;  %2930 = vset.pattern.permute.xlu1 %v2953_v12 }
   0x2   :  { %v34_v1 = vld [vmem:[%s3405_s1] sm:$0xff]  ;;  %v77_v3 = vsel %vm75_vm0, %v33_v0, 0  ;;  %v67_v5 = vsel %vm62_vm1, %v35_v2, 0  ;;  %v37_v7 = vld [vmem:[%s3405_s1 + $0x18] sm:$0xff]  ;;  %v70_v11 = vsel %vm62_vm1, %v36_v6, 0  ;;  %v39_v16 = vld [vmem:[%s3406_s2 + $0x8] sm:$0xff] }
   0x3   :  { %v64_v4 = vsel %vm62_vm1, %v34_v1, 0  ;;  %v3024_v8 = vand.u32 4294901760, %v77_v3  ;;  %v3028_v10 = vand.u32 4294901760, %v67_v5  ;;  %v41_v13 = vld [vmem:[%s3406_s2 + $0x18] sm:$0xff]  ;;  %v3034_v14 = vand.u32 4294901760, %v70_v11  ;;  %v40_v21 = vld [vmem:[%s3406_s2 + $0x10] sm:$0xff]  ;;  %49 = vperm.xlu1 %2930, %v39_v16  }
   0x4   :  { %v3026_v9 = vand.u32 4294901760, %v64_v4  ;;  %v73_v15 = vsel %vm62_vm1, %v37_v7, 0  ;;  %59 = vperm.xlu0 %2929, %v41_v13   ;;  %v38_v27 = vld [vmem:[%s3406_s2] sm:$0xff] }
   0x5   :  { %2643 = vmatprep.subr.mxu0 %v3024_v8  ;;  %v217_v18 = vsub.f32 %v77_v3, %v3024_v8  ;;  %v156_v19 = vsub.f32 %v67_v5, %v3028_v10  ;;  %v3045_v20 = vand.u32 4294901760, %v73_v15  ;;  %v166_v22 = vsub.f32 %v70_v11, %v3034_v14 }
   0x6   :  { %v146_v17 = vsub.f32 %v64_v4, %v3026_v9  ;;  %2653 = vmatprep.mubr.f32.mxu1 %v3026_v9  ;;  %2644 = vmatpush3.msra.mxu0 %v3024_v8 }
   0x7   :  { %v218_v24 = vand.u32 4294901760, %v217_v18  ;;  %v157_v25 = vand.u32 4294901760, %v156_v19  ;;  %2659 = vmatprep.subr.mxu0 %v217_v18  ;;  %v176_v26 = vsub.f32 %v73_v15, %v3045_v20  ;;  %v167_v28 = vand.u32 4294901760, %v166_v22 }
   0x8   :  { %v147_v23 = vand.u32 4294901760, %v146_v17  ;;  %54 = vperm.xlu0 %2929, %v40_v21  }
   0x9   :  { %14 = vsyncpa [#allocation3], 0  ;;  %v219_v30 = vsub.f32 %v217_v18, %v218_v24  ;;  %v158_v31 = vsub.f32 %v156_v19, %v157_v25  ;;  %v177_v32 = vand.u32 4294901760, %v176_v26  ;;  %v665_v33 = vld [vmem:[%s3408_s4 + $0x18] sm:$0xff]  ;;  %v168_v34 = vsub.f32 %v166_v22, %v167_v28  ;;  %44 = vperm.xlu1 %2930, %v38_v27   ;;  %v663_v41 = vld [vmem:[%s3408_s4 + $0x8] sm:$0xff] }
   0xa   :  { %v148_v29 = vsub.f32 %v146_v17, %v147_v23  ;;  %v664_v42 = vld [vmem:[%s3408_s4 + $0x10] sm:$0xff]  ;;  %v1324_v43 = vld [vmem:[%s3410_s6 + $0x18] sm:$0xff]  ;;  %v662_v44 = vld [vmem:[%s3408_s4] sm:$0xff]  ;;  %vm686_vm2 = vcmask 261120   ;;  %vm2955_vm3 = vmmov 0   ;;  %vm2471_vm4 = vcmask 125952  }
   0xb   :  { %v220_v36 = vand.u32 4294901760, %v219_v30  ;;  %v159_v37 = vand.u32 4294901760, %v158_v31  ;;  %v178_v38 = vsub.f32 %v176_v26, %v177_v32  ;;  %v169_v39 = vand.u32 4294901760, %v168_v34  ;;  %v1322_v45 = vld [vmem:[%s3410_s6 + $0x8] sm:$0xff]  ;;  %v1323_v46 = vld [vmem:[%s3410_s6 + $0x10] sm:$0xff]  ;;  %v1321_v48 = vld [vmem:[%s3410_s6] sm:$0xff] }
   0xc   :  { %v149_v35 = vand.u32 4294901760, %v148_v29  ;;  %683 = vperm.xlu0 %2929, %v665_v33   ;;  %v1976_v47 = vld [vmem:[%s3412_s8] sm:$0xf]  ;;  %v659_v11 = vld [vmem:[%s3407_s3 + $0x8] sm:$0xff]  ;;  %v661_v29 = vld [vmem:[%s3407_s3 + $0x18] sm:$0xff] }
   0xd   :  { %2651 = vmatprep.subr.mxu1 %v220_v36  ;;  %v179_v40 = vand.u32 4294901760, %v178_v38  ;;  %678 = vperm.xlu1 %2930, %v664_v42   ;;  %v658_v49 = vld [vmem:[%s3407_s3] sm:$0xff] }
   0xe   :  { %2645 = vmatprep.mubr.f32.mxu0 %v149_v35  ;;  %2652 = vmatpush3.msra.mxu1 %v220_v36  ;;  %v688_v50 = vsel %vm686_vm2, %v658_v49, 0 }
   0xf   :  { %2646 = vmatmul.mubr.f32.vlgmr.msra.gmra.mxu0 %v159_v37  ;;  %2654 = vmatmul.mubr.f32.vlgmr.msra.gmra.mxu1 %v3028_v10  ;;  %v3102_v51 = vand.u32 4294901760, %v688_v50 }
  0x10   :  { %2660 = vmatpush3.msra.mxu0 %v217_v18  ;;  %2667 = vmatprep.subr.mxu1 %v3024_v8 }
  0x11   :  { %2648 = vmatprep.mubr.f32.mxu0 %v169_v39  ;;  %2668 = vmatpush3.msra.mxu1 %v3024_v8  ;;  %v3105_v52 = vsub.f32 %v688_v50, %v3102_v51 }
  0x12   :  { %2656 = vmatprep.mubr.f32.mxu1 %v3034_v14  ;;  %2675 = vmatprep.subr.mxu0 %v218_v24 }
  0x13   :  { %2649 = vmatmul.mubr.f32.gmra.mxu0 %v179_v40  ;;  %2657 = vmatmul.mubr.f32.gmra.mxu1 %v3045_v20  ;;  %v770_v53 = vand.u32 4294901760, %v3105_v52  ;;  %v697_v40 = vsel %vm686_vm2, %v661_v29, 0 }
  0x14   :  { %2661 = vmatprep.mubr.f32.mxu0 %v146_v17  ;;  %2669 = vmatprep.mubr.f32.mxu1 %v147_v23  ;;  %v3131_v50 = vand.u32 4294901760, %v697_v40 }
  0x15   :  { %2683 = vmatprep.subr.mxu1 %v3024_v8  ;;  %673 = vperm.xlu0 %2929, %v663_v41   ;;  %v771_v54 = vsub.f32 %v3105_v52, %v770_v53 }
  0x16   :  { %668 = vperm.xlu1 %2930, %v662_v44  }
  0x17   :  { %2662 = vmatmul.mubr.f32.vlgmr.msra.gmra.mxu0 %v156_v19  ;;  %2670 = vmatmul.mubr.f32.vlgmr.msra.gmra.mxu1 %v157_v25  ;;  %v772_v55 = vand.u32 4294901760, %v771_v54 }
  0x18   :  { %2676 = vmatpush3.msra.mxu0 %v218_v24  ;;  %2664 = vmatprep.mubr.f32.mxu0 %v166_v22  ;;  %v660_v22 = vld [vmem:[%s3407_s3 + $0x10] sm:$0xff] }
  0x19   :  { %2684 = vmatpush3.msra.mxu1 %v3024_v8  ;;  %2672 = vmatprep.mubr.f32.mxu1 %v167_v28  ;;  %v694_v34 = vsel %vm686_vm2, %v660_v22, 0 }
  0x1a   :  { %1342 = vperm.xlu0 %2929, %v1324_v43   ;;  %1337 = vperm.xlu1 %2930, %v1323_v46   ;;  %v3129_v43 = vand.u32 4294901760, %v694_v34 }
  0x1b   :  { %2665 = vmatmul.mubr.f32.gmra.mxu0 %v176_v26  ;;  %2673 = vmatmul.mubr.f32.gmra.mxu1 %v177_v32 }
  0x1c   :  { %2677 = vmatprep.mubr.f32.mxu0 %v3026_v9  ;;  %2685 = vmatprep.mubr.f32.mxu1 %v3026_v9 }
  0x1e   :  { %1332 = vperm.xlu0 %2929, %v1322_v45   ;;  %1327 = vperm.xlu1 %2930, %v1321_v48  }
  0x1f   :  { %2678 = vmatmul.mubr.f32.vlgmr.msra.gmra.mxu0 %v3028_v10  ;;  %2686 = vmatmul.mubr.f32.vlgmr.msra.gmra.mxu1 %v3028_v10 }
  0x20   :  { %2680 = vmatprep.mubr.f32.mxu0 %v3034_v14  ;;  %2688 = vmatprep.mubr.f32.mxu1 %v3034_v14 }
  0x22   :  { %1979 = vperm.xlu0 %2929, %v1976_v47  }
  0x23   :  { %2681 = vmatmul.mubr.f32.gmra.mxu0 %v3045_v20  ;;  %2689 = vmatmul.mubr.f32.gmra.mxu1 %v3045_v20  ;;  %v691_v20 = vsel %vm686_vm2, %v659_v11, 0 }
  0x24   :  { %2713 = vmatprep.mubr.f32.mxu1 %v3102_v51  ;;  %2699 = vmatprep.mubr.f32.mxu0 %v772_v55  ;;  %v3119_v28 = vand.u32 4294901760, %v691_v20 }
  0x26   :  { %v3127_v42 = vsub.f32 %v691_v20, %v3119_v28 }
  0x7e   :  { %v50_v56 = vpop.permute.xlu1 %49 }
  0x7f   :  { %v60_v61 = vpop.permute.xlu0 %59 }
  0x83   :  { %v55_v9 = vpop.permute.xlu0 %54 }
  0x84   :  { %v45_v1 = vpop.permute.xlu1 %44 }
  0xcf   :  { %v2647_v57 = vpop.f32.mrf.mxu0  ;;  %v2655_v58 = vpop.f32.mrf.mxu1 }
  0xd0   :  { %v162_v63 = vadd.f32 %v2647_v57, %v50_v56 }
  0xd1   :  { %v151_v59 = vpop.f32.mrf.mxu0  ;;  %v257_v60 = vpop.f32.mrf.mxu1 }
  0xd2   :  { %v152_v3 = vadd.f32 %v151_v59, %v45_v1  ;;  %v264_v6 = vadd.f32 %v2655_v58, %v162_v63  ;;  %v3136_v59 = vsub.f32 %v694_v34, %v3129_v43 }
  0xd3   :  { %v2650_v62 = vpop.f32.mrf.mxu0  ;;  %v2658_v0 = vpop.f32.mrf.mxu1 }
  0xd4   :  { %v182_v7 = vadd.f32 %v2650_v62, %v60_v61  ;;  %v258_v12 = vadd.f32 %v257_v60, %v152_v3  ;;  %v780_v62 = vand.u32 4294901760, %v3127_v42 }
  0xd5   :  { %v171_v2 = vpop.f32.mrf.mxu0  ;;  %v269_v4 = vpop.f32.mrf.mxu1 }
  0xd6   :  { %v172_v13 = vadd.f32 %v171_v2, %v55_v9  ;;  %v276_v17 = vadd.f32 %v2658_v0, %v182_v7  ;;  %v3142_v0 = vsub.f32 %v697_v40, %v3131_v50  ;;  %v781_v7 = vsub.f32 %v3127_v42, %v780_v62  ;;  %v679_v40 = vpop.permute.xlu1 %678 }
  0xd7   :  { %v2663_v5 = vpop.f32.mrf.mxu0  ;;  %v2671_v8 = vpop.f32.mrf.mxu1 }
  0xd8   :  { %v357_v14 = vadd.f32 %v2663_v5, %v264_v6  ;;  %v270_v23 = vadd.f32 %v269_v4, %v172_v13  ;;  %v790_v4 = vand.u32 4294901760, %v3136_v59  ;;  %v800_v9 = vand.u32 4294901760, %v3142_v0 }
  0xd9   :  { %v349_v10 = vpop.f32.mrf.mxu0  ;;  %v444_v15 = vpop.f32.mrf.mxu1 }
  0xda   :  { %v350_v18 = vadd.f32 %v349_v10, %v258_v12  ;;  %v453_v24 = vadd.f32 %v2671_v8, %v357_v14  ;;  %v791_v12 = vsub.f32 %v3136_v59, %v790_v4  ;;  %v782_v14 = vand.u32 4294901760, %v781_v7 }
  0xdb   :  { %v2666_v16 = vpop.f32.mrf.mxu0  ;;  %v2674_v19 = vpop.f32.mrf.mxu1 }
  0xdc   :  { %v371_v25 = vadd.f32 %v2666_v16, %v276_v17  ;;  %v445_v30 = vadd.f32 %v444_v15, %v350_v18  ;;  %v801_v17 = vsub.f32 %v3142_v0, %v800_v9 }
  0xdd   :  { %v363_v21 = vpop.f32.mrf.mxu0  ;;  %v460_v26 = vpop.f32.mrf.mxu1 }
  0xde   :  { %v364_v31 = vadd.f32 %v363_v21, %v270_v23  ;;  %v469_v36 = vadd.f32 %v2674_v19, %v371_v25  ;;  %v792_v21 = vand.u32 4294901760, %v791_v12 }
  0xdf   :  { %v2679_v27 = vpop.f32.mrf.mxu0  ;;  %v2687_v33 = vpop.f32.mrf.mxu1 }
  0xe0   :  { %v549_v32 = vadd.f32 %v2679_v27, %v453_v24  ;;  %v461_v44 = vadd.f32 %v460_v26, %v364_v31  ;;  %v802_v24 = vand.u32 4294901760, %v801_v17 }
  0xe1   :  { %v542_v35 = vpop.f32.mrf.mxu0  ;;  %v632_v39 = vpop.f32.mrf.mxu1 }
  0xe2   :  { %v639_v37 = vadd.f32 %v2687_v33, %v549_v32  ;;  %v543_v38 = vadd.f32 %v542_v35, %v445_v30 }
  0xe3   :  { %v2682_v41 = vpop.f32.mrf.mxu0  ;;  %v2690_v48 = vpop.f32.mrf.mxu1 }
  0xe4   :  { %v655_v45 = vmax.f32 %v639_v37, 0.0  ;;  %v633_v46 = vadd.f32 %v632_v39, %v543_v38  ;;  %v561_v47 = vadd.f32 %v2682_v41, %v469_v36  ;;  %v684_v37 = vpop.permute.xlu0 %683 }
  0xe5   :  { %v554_v49 = vpop.f32.mrf.mxu0  ;;  %v644_v57 = vpop.f32.mrf.mxu1 }
  0xe6   :  { %v654_v54 = vmax.f32 %v633_v46, 0.0  ;;  %v651_v55 = vadd.f32 %v2690_v48, %v561_v47  ;;  %v555_v56 = vadd.f32 %v554_v49, %v461_v44  ;;  %v3133_v58 = vand.u32 4294901760, %v655_v45  ;;  %v669_v46 = vpop.permute.xlu1 %668 }
  0xe8   :  { %v657_v60 = vmax.f32 %v651_v55, 0.0  ;;  %v645_v61 = vadd.f32 %v644_v57, %v555_v56  ;;  %v3139_v63 = vand.u32 4294901760, %v654_v54  ;;  %v848_v3 = vsub.f32 %v655_v45, %v3133_v58  ;;  %v1318_v57 = vld [vmem:[%s3409_s5 + $0x8] sm:$0xff] }
  0xea   :  { %v3144_v1 = vand.u32 4294901760, %v657_v60  ;;  %v656_v2 = vmax.f32 %v645_v61, 0.0  ;;  %v855_v8 = vsub.f32 %v654_v54, %v3139_v63  ;;  %v849_v13 = vand.u32 4294901760, %v848_v3 }
  0xec   :  { %v834_v5 = vsub.f32 %v657_v60, %v3144_v1  ;;  %v3149_v6 = vand.u32 4294901760, %v656_v2  ;;  %2691 = vmatprep.subr.mxu0 %v3144_v1  ;;  %v856_v18 = vand.u32 4294901760, %v855_v8  ;;  %v850_v22 = vsub.f32 %v848_v3, %v849_v13 }
  0xed   :  { %2692 = vmatpush3.msra.mxu0 %v3144_v1 }
  0xee   :  { %v841_v10 = vsub.f32 %v656_v2, %v3149_v6  ;;  %2693 = vmatprep.subr.mxu0 %v3149_v6  ;;  %v835_v11 = vand.u32 4294901760, %v834_v5  ;;  %v857_v25 = vsub.f32 %v855_v8, %v856_v18  ;;  %v851_v26 = vand.u32 4294901760, %v850_v22 }
  0xef   :  { %2694 = vmatpush3.msra.mxu0 %v3149_v6 }
  0xf0   :  { %2695 = vmatprep.subr.mxu0 %v3133_v58  ;;  %v836_v15 = vsub.f32 %v834_v5, %v835_v11  ;;  %v842_v16 = vand.u32 4294901760, %v841_v10  ;;  %v858_v27 = vand.u32 4294901760, %v857_v25 }
  0xf1   :  { %2696 = vmatpush3.msra.mxu0 %v3133_v58 }
  0xf2   :  { %2697 = vmatprep.subr.mxu0 %v3139_v63  ;;  %v837_v19 = vand.u32 4294901760, %v836_v15  ;;  %v843_v20 = vsub.f32 %v841_v10, %v842_v16 }
  0xf3   :  { %2698 = vmatpush3.msra.mxu0 %v3139_v63 }
  0xf4   :  { %2700 = vmatmul.mubr.f32.vlgmr.msra.gmra.mxu0 %v782_v14  ;;  %2705 = vmatprep.subr.mxu1 %v837_v19  ;;  %v844_v23 = vand.u32 4294901760, %v843_v20 }
  0xf5   :  { %2719 = vmatprep.subr.mxu0 %v834_v5  ;;  %2706 = vmatpush3.msra.mxu1 %v837_v19 }
  0xf6   :  { %2720 = vmatpush3.msra.mxu0 %v834_v5  ;;  %2707 = vmatprep.subr.mxu1 %v844_v23  ;;  %v1319_v5 = vld [vmem:[%s3409_s5 + $0x10] sm:$0xff] }
  0xf7   :  { %2721 = vmatprep.subr.mxu0 %v841_v10  ;;  %2702 = vmatprep.mubr.f32.mxu0 %v792_v21  ;;  %v1352_v15 = vsel %vm686_vm2, %v1319_v5, 0 }
  0xf8   :  { %2708 = vmatpush3.msra.mxu1 %v844_v23  ;;  %2722 = vmatpush3.msra.mxu0 %v841_v10  ;;  %v3238_v23 = vand.u32 4294901760, %v1352_v15 }
  0xf9   :  { %2703 = vmatmul.mubr.f32.gmra.mxu0 %v802_v24  ;;  %2709 = vmatprep.subr.mxu1 %v851_v26 }
  0xfa   :  { %2723 = vmatprep.subr.mxu0 %v848_v3  ;;  %2710 = vmatpush3.msra.mxu1 %v851_v26 }
  0xfb   :  { %2724 = vmatpush3.msra.mxu0 %v848_v3  ;;  %2711 = vmatprep.subr.mxu1 %v858_v27  ;;  %v1349_v3 = vsel %vm686_vm2, %v1318_v57, 0 }
  0xfc   :  { %2725 = vmatprep.subr.mxu0 %v855_v8  ;;  %2712 = vmatpush3.msra.mxu1 %v858_v27  ;;  %v3231_v10 = vand.u32 4294901760, %v1349_v3 }
  0xfd   :  { %2726 = vmatpush3.msra.mxu0 %v855_v8  ;;  %2714 = vmatmul.mubr.f32.vlgmr.msra.gmra.mxu1 %v3119_v28 }
  0xfe   :  { %2727 = vmatprep.mubr.f32.mxu0 %v3105_v52  ;;  %2733 = vmatprep.subr.mxu1 %v3144_v1  ;;  %v1317_v52 = vld [vmem:[%s3409_s5] sm:$0xff]  ;;  %v3241_v27 = vsub.f32 %v1349_v3, %v3231_v10 }
  0xff   :  { %2747 = vmatprep.subr.mxu0 %v835_v11  ;;  %2728 = vmatmul.mubr.f32.vlgmr.msra.gmra.mxu0 %v3127_v42 }
 0x100   :  { %2734 = vmatpush3.msra.mxu1 %v3144_v1  ;;  %2748 = vmatpush3.msra.mxu0 %v835_v11  ;;  %v1320_v11 = vld [vmem:[%s3409_s5 + $0x18] sm:$0xff] }
 0x101   :  { %2735 = vmatprep.subr.mxu1 %v3149_v6  ;;  %2749 = vmatprep.subr.mxu0 %v842_v16  ;;  %v1355_v20 = vsel %vm686_vm2, %v1320_v11, 0 }
 0x102   :  { %2716 = vmatprep.mubr.f32.mxu1 %v3129_v43  ;;  %2736 = vmatpush3.msra.mxu1 %v3149_v6 }
 0x103   :  { %2750 = vmatpush3.msra.mxu0 %v842_v16  ;;  %2717 = vmatmul.mubr.f32.gmra.mxu1 %v3131_v50 }
 0x104   :  { %2737 = vmatprep.subr.mxu1 %v3133_v58  ;;  %2751 = vmatprep.subr.mxu0 %v849_v13 }
 0x105   :  { %2730 = vmatprep.mubr.f32.mxu0 %v3136_v59  ;;  %2738 = vmatpush3.msra.mxu1 %v3133_v58 }
 0x106   :  { %2752 = vmatpush3.msra.mxu0 %v849_v13  ;;  %2739 = vmatprep.subr.mxu1 %v3139_v63 }
 0x107   :  { %2731 = vmatmul.mubr.f32.gmra.mxu0 %v3142_v0  ;;  %2753 = vmatprep.subr.mxu0 %v856_v18 }
 0x108   :  { %2740 = vmatpush3.msra.mxu1 %v3139_v63  ;;  %2741 = vmatprep.mubr.f32.mxu1 %v770_v53  ;;  %v1346_v53 = vsel %vm686_vm2, %v1317_v52, 0 }
 0x109   :  { %2754 = vmatpush3.msra.mxu0 %v856_v18  ;;  %2742 = vmatmul.mubr.f32.vlgmr.msra.gmra.mxu1 %v780_v62  ;;  %v3214_v29 = vand.u32 4294901760, %v1346_v53 }
 0x10a   :  { %2761 = vmatprep.subr.mxu1 %v3144_v1  ;;  %2755 = vmatprep.mubr.f32.mxu0 %v3102_v51 }
 0x10b   :  { %2762 = vmatpush3.msra.mxu1 %v3144_v1  ;;  %2756 = vmatmul.mubr.f32.vlgmr.msra.gmra.mxu0 %v3119_v28  ;;  %v3217_v30 = vsub.f32 %v1346_v53, %v3214_v29  ;;  %v3243_v53 = vand.u32 4294901760, %v1355_v20 }
 0x10c   :  { %2763 = vmatprep.subr.mxu1 %v3149_v6  ;;  %2744 = vmatprep.mubr.f32.mxu1 %v790_v4 }
 0x10d   :  { %2764 = vmatpush3.msra.mxu1 %v3149_v6  ;;  %2758 = vmatprep.mubr.f32.mxu0 %v3129_v43 }
 0x10e   :  { %2745 = vmatmul.mubr.f32.gmra.mxu1 %v800_v9  ;;  %2765 = vmatprep.subr.mxu1 %v3133_v58 }
 0x10f   :  { %2766 = vmatpush3.msra.mxu1 %v3133_v58  ;;  %2759 = vmatmul.mubr.f32.gmra.mxu0 %v3131_v50 }
 0x110   :  { %2767 = vmatprep.subr.mxu1 %v3139_v63  ;;  %2769 = vmatprep.mubr.f32.mxu1 %v3102_v51  ;;  %v1428_v51 = vand.u32 4294901760, %v3217_v30 }
 0x111   :  { %2768 = vmatpush3.msra.mxu1 %v3139_v63 }
 0x112   :  { %2770 = vmatmul.mubr.f32.vlgmr.msra.gmra.mxu1 %v3119_v28  ;;  %v1429_v28 = vsub.f32 %v3217_v30, %v1428_v51 }
 0x113   :  { %2772 = vmatprep.mubr.f32.mxu1 %v3129_v43  ;;  %v674_v43 = vpop.permute.xlu0 %673 }
 0x114   :  { %v1430_v31 = vand.u32 4294901760, %v1429_v28 }
 0x116   :  { %2773 = vmatmul.mubr.f32.gmra.mxu1 %v3131_v50  ;;  %2783 = vmatprep.mubr.f32.mxu0 %v1430_v31 }
 0x117   :  { %2797 = vmatprep.mubr.f32.mxu1 %v3214_v29 }
 0x1b4   :  { %v2701_v32 = vpop.f32.mrf.mxu0 }
 0x1b5   :  { %v785_v44 = vadd.f32 %v2701_v32, %v674_v43 }
 0x1b6   :  { %v774_v33 = vpop.f32.mrf.mxu0 }
 0x1b7   :  { %v775_v47 = vadd.f32 %v774_v33, %v669_v46 }
 0x1b9   :  { %v2704_v34 = vpop.f32.mrf.mxu0 }
 0x1ba   :  { %v805_v50 = vadd.f32 %v2704_v34, %v684_v37 }
 0x1bb   :  { %v794_v35 = vpop.f32.mrf.mxu0 }
 0x1bc   :  { %v795_v58 = vadd.f32 %v794_v35, %v679_v40  ;;  %v3248_v35 = vsub.f32 %v1352_v15, %v3238_v23  ;;  %v3254_v40 = vsub.f32 %v1355_v20, %v3243_v53 }
 0x1bd   :  { %v2715_v36 = vpop.f32.mrf.mxu1 }
 0x1be   :  { %v902_v48 = vadd.f32 %v2715_v36, %v785_v44  ;;  %v1448_v44 = vand.u32 4294901760, %v3248_v35 }
 0x1bf   :  { %v895_v38 = vpop.f32.mrf.mxu1  ;;  %v2729_v39 = vpop.f32.mrf.mxu0 }
 0x1c0   :  { %v896_v54 = vadd.f32 %v895_v38, %v775_v47  ;;  %v1001_v59 = vadd.f32 %v2729_v39, %v902_v48  ;;  %v1438_v38 = vand.u32 4294901760, %v3241_v27 }
 0x1c1   :  { %v993_v42 = vpop.f32.mrf.mxu0 }
 0x1c2   :  { %v994_v63 = vadd.f32 %v993_v42, %v896_v54  ;;  %v1439_v47 = vsub.f32 %v3241_v27, %v1438_v38 }
 0x1c3   :  { %v2718_v41 = vpop.f32.mrf.mxu1 }
 0x1c4   :  { %v914_v60 = vadd.f32 %v2718_v41, %v805_v50  ;;  %v1440_v57 = vand.u32 4294901760, %v1439_v47 }
 0x1c5   :  { %v907_v45 = vpop.f32.mrf.mxu1 }
 0x1c6   :  { %v908_v0 = vadd.f32 %v907_v45, %v795_v58 }
 0x1c7   :  { %v2732_v49 = vpop.f32.mrf.mxu0 }
 0x1c8   :  { %v1015_v6 = vadd.f32 %v2732_v49, %v914_v60  ;;  %v1458_v49 = vand.u32 4294901760, %v3254_v40 }
 0x1c9   :  { %v1007_v55 = vpop.f32.mrf.mxu0  ;;  %v2743_v56 = vpop.f32.mrf.mxu1 }
 0x1ca   :  { %v1100_v1 = vadd.f32 %v2743_v56, %v1001_v59  ;;  %v1008_v12 = vadd.f32 %v1007_v55, %v908_v0  ;;  %v1449_v55 = vsub.f32 %v3248_v35, %v1448_v44  ;;  %v1459_v60 = vsub.f32 %v3254_v40, %v1458_v49 }
 0x1cb   :  { %v1091_v61 = vpop.f32.mrf.mxu1  ;;  %v2757_v62 = vpop.f32.mrf.mxu0 }
 0x1cc   :  { %v1092_v7 = vadd.f32 %v1091_v61, %v994_v63  ;;  %v1205_v13 = vadd.f32 %v2757_v62, %v1100_v1  ;;  %v1450_v0 = vand.u32 4294901760, %v1449_v55  ;;  %v1460_v3 = vand.u32 4294901760, %v1459_v60 }
 0x1cd   :  { %v1198_v2 = vpop.f32.mrf.mxu0 }
 0x1ce   :  { %v2746_v4 = vpop.f32.mrf.mxu1  ;;  %v1199_v17 = vadd.f32 %v1198_v2, %v1092_v7 }
 0x1cf   :  { %v2760_v9 = vpop.f32.mrf.mxu0  ;;  %v1116_v14 = vadd.f32 %v2746_v4, %v1015_v6 }
 0x1d0   :  { %v1107_v8 = vpop.f32.mrf.mxu1 }
 0x1d1   :  { %v1108_v18 = vadd.f32 %v1107_v8, %v1008_v12  ;;  %v1210_v21 = vpop.f32.mrf.mxu0  ;;  %v1217_v24 = vadd.f32 %v2760_v9, %v1116_v14 }
 0x1d2   :  { %v2771_v16 = vpop.f32.mrf.mxu1 }
 0x1d3   :  { %v1298_v19 = vadd.f32 %v2771_v16, %v1205_v13  ;;  %v1211_v28 = vadd.f32 %v1210_v21, %v1108_v18  ;;  %v1338_v13 = vpop.permute.xlu1 %1337 }
 0x1d4   :  { %v1291_v22 = vpop.f32.mrf.mxu1 }
 0x1d5   :  { %v1314_v25 = vmax.f32 %v1298_v19, 0.0  ;;  %v1292_v26 = vadd.f32 %v1291_v22, %v1199_v17 }
 0x1d6   :  { %v2774_v52 = vpop.f32.mrf.mxu1 }
 0x1d7   :  { %v1313_v31 = vmax.f32 %v1292_v26, 0.0  ;;  %v1310_v32 = vadd.f32 %v2774_v52, %v1217_v24  ;;  %v3245_v33 = vand.u32 4294901760, %v1314_v25  ;;  %v1328_v19 = vpop.permute.xlu1 %1327 }
 0x1d8   :  { %v1303_v34 = vpop.f32.mrf.mxu1 }
 0x1d9   :  { %v1316_v36 = vmax.f32 %v1310_v32, 0.0  ;;  %v1304_v37 = vadd.f32 %v1303_v34, %v1211_v28  ;;  %v3251_v39 = vand.u32 4294901760, %v1313_v31  ;;  %v1506_v43 = vsub.f32 %v1314_v25, %v3245_v33 }
 0x1db   :  { %v3256_v41 = vand.u32 4294901760, %v1316_v36  ;;  %v1315_v42 = vmax.f32 %v1304_v37, 0.0  ;;  %v1513_v48 = vsub.f32 %v1313_v31, %v3251_v39  ;;  %v1507_v56 = vand.u32 4294901760, %v1506_v43 }
 0x1dd   :  { %v1492_v45 = vsub.f32 %v1316_v36, %v3256_v41  ;;  %v3261_v46 = vand.u32 4294901760, %v1315_v42  ;;  %2775 = vmatprep.subr.mxu0 %v3256_v41  ;;  %v1514_v61 = vand.u32 4294901760, %v1513_v48  ;;  %v1508_v1 = vsub.f32 %v1506_v43, %v1507_v56 }
 0x1de   :  { %2776 = vmatpush3.msra.mxu0 %v3256_v41 }
 0x1df   :  { %v1499_v50 = vsub.f32 %v1315_v42, %v3261_v46  ;;  %2777 = vmatprep.subr.mxu0 %v3261_v46  ;;  %v1493_v54 = vand.u32 4294901760, %v1492_v45  ;;  %v1515_v4 = vsub.f32 %v1513_v48, %v1514_v61  ;;  %v1509_v5 = vand.u32 4294901760, %v1508_v1 }
 0x1e0   :  { %2778 = vmatpush3.msra.mxu0 %v3261_v46 }
 0x1e1   :  { %2779 = vmatprep.subr.mxu0 %v3245_v33  ;;  %v1494_v58 = vsub.f32 %v1492_v45, %v1493_v54  ;;  %v1500_v59 = vand.u32 4294901760, %v1499_v50  ;;  %v1516_v6 = vand.u32 4294901760, %v1515_v4 }
 0x1e2   :  { %2780 = vmatpush3.msra.mxu0 %v3245_v33 }
 0x1e3   :  { %2781 = vmatprep.subr.mxu0 %v3251_v39  ;;  %v1495_v62 = vand.u32 4294901760, %v1494_v58  ;;  %v1501_v63 = vsub.f32 %v1499_v50, %v1500_v59 }
 0x1e4   :  { %2782 = vmatpush3.msra.mxu0 %v3251_v39 }
 0x1e5   :  { %2784 = vmatmul.mubr.f32.vlgmr.msra.gmra.mxu0 %v1440_v57  ;;  %2789 = vmatprep.subr.mxu1 %v1495_v62  ;;  %v1502_v2 = vand.u32 4294901760, %v1501_v63 }
 0x1e6   :  { %2803 = vmatprep.subr.mxu0 %v1492_v45  ;;  %2790 = vmatpush3.msra.mxu1 %v1495_v62 }
 0x1e7   :  { %2804 = vmatpush3.msra.mxu0 %v1492_v45  ;;  %2791 = vmatprep.subr.mxu1 %v1502_v2 }
 0x1e8   :  { %2805 = vmatprep.subr.mxu0 %v1499_v50  ;;  %2786 = vmatprep.mubr.f32.mxu0 %v1450_v0 }
 0x1e9   :  { %2792 = vmatpush3.msra.mxu1 %v1502_v2  ;;  %2806 = vmatpush3.msra.mxu0 %v1499_v50 }
 0x1ea   :  { %2787 = vmatmul.mubr.f32.gmra.mxu0 %v1460_v3  ;;  %2793 = vmatprep.subr.mxu1 %v1509_v5 }
 0x1eb   :  { %2807 = vmatprep.subr.mxu0 %v1506_v43  ;;  %2794 = vmatpush3.msra.mxu1 %v1509_v5 }
 0x1ec   :  { %2808 = vmatpush3.msra.mxu0 %v1506_v43  ;;  %2795 = vmatprep.subr.mxu1 %v1516_v6 }
 0x1ed   :  { %2809 = vmatprep.subr.mxu0 %v1513_v48  ;;  %2796 = vmatpush3.msra.mxu1 %v1516_v6 }
 0x1ee   :  { %2810 = vmatpush3.msra.mxu0 %v1513_v48  ;;  %2798 = vmatmul.mubr.f32.vlgmr.msra.gmra.mxu1 %v3231_v10 }
 0x1ef   :  { %2811 = vmatprep.mubr.f32.mxu0 %v3217_v30  ;;  %2817 = vmatprep.subr.mxu1 %v3256_v41  ;;  %v2954_v30 = vmov 0.0  }
 0x1f0   :  { %2831 = vmatprep.subr.mxu0 %v1493_v54  ;;  %2812 = vmatmul.mubr.f32.vlgmr.msra.gmra.mxu0 %v3241_v27  ;;  %v1975_v27 = vld [vmem:[%s3411_s7] sm:$0xf]  ;;  %s2956_s7 = smov [#allocation2]  }
 0x1f1   :  { %2818 = vmatpush3.msra.mxu1 %v3256_v41  ;;  %2832 = vmatpush3.msra.mxu0 %v1493_v54  ;;  %v1983_v37 = vsel %vm686_vm2, %v1975_v27, 0  ;;  %s2479_s10 = sshll.u32 %s2956_s7, 4  ;;  %s2480_s10 = int_to_ptr.vmem [resolvable:$true] %s2479_s10 }
 0x1f2   :  { %2819 = vmatprep.subr.mxu1 %v3261_v46  ;;  %2833 = vmatprep.subr.mxu0 %v1500_v59  ;;  %v3332_v43 = vand.u32 4294901760, %v1983_v37  ;;  %s2931_s11 = scalar_lea.vmem %s2480_s10, 64  ;;  %p2936_p1 = scmp.lt.s32.totalorder %s2480_s10, %s2480_s10 }
 0x1f3   :  { %2800 = vmatprep.mubr.f32.mxu1 %v3238_v23  ;;  %2820 = vmatpush3.msra.mxu1 %v3261_v46  ;;  %p2932_p0 = scmp.ne.s32.totalorder %s2480_s10, %s2931_s11  ;;  %p2937_p2 = scmp.lt.s32.totalorder %s2931_s11, %s2931_s11 }
 0x1f4   :  { %2834 = vmatpush3.msra.mxu0 %v1500_v59  ;;  %2801 = vmatmul.mubr.f32.gmra.mxu1 %v3243_v53 }
 0x1f5   :  { %2821 = vmatprep.subr.mxu1 %v3245_v33  ;;  %2835 = vmatprep.subr.mxu0 %v1507_v56  ;;  %p2938_p3 = por %p2937_p2, %p2936_p1 }
 0x1f6   :  { %2814 = vmatprep.mubr.f32.mxu0 %v3248_v35  ;;  %2822 = vmatpush3.msra.mxu1 %v3245_v33 }
 0x1f7   :  { %2836 = vmatpush3.msra.mxu0 %v1507_v56  ;;  %2823 = vmatprep.subr.mxu1 %v3251_v39  ;;  %v3335_v56 = vsub.f32 %v1983_v37, %v3332_v43  ;;  %p2939_p4 = pnand %p2938_p3, %p2932_p0 }
 0x1f8   :  { %2815 = vmatmul.mubr.f32.gmra.mxu0 %v3254_v40  ;;  %2837 = vmatprep.subr.mxu0 %v1514_v61 }
 0x1f9   :  { %2824 = vmatpush3.msra.mxu1 %v3251_v39  ;;  %2825 = vmatprep.mubr.f32.mxu1 %v1428_v51  ;;  %v2056_v2 = vand.u32 4294901760, %v3335_v56 }
 0x1fa   :  { %2838 = vmatpush3.msra.mxu0 %v1514_v61  ;;  %2826 = vmatmul.mubr.f32.vlgmr.msra.gmra.mxu1 %v1438_v38 }
 0x1fb   :  { %2845 = vmatprep.subr.mxu1 %v3256_v41  ;;  %2839 = vmatprep.mubr.f32.mxu0 %v3214_v29 }
 0x1fc   :  { %2846 = vmatpush3.msra.mxu1 %v3256_v41  ;;  %2840 = vmatmul.mubr.f32.vlgmr.msra.gmra.mxu0 %v3231_v10 }
 0x1fd   :  { %2847 = vmatprep.subr.mxu1 %v3261_v46  ;;  %2828 = vmatprep.mubr.f32.mxu1 %v1448_v44 }
 0x1fe   :  { %2848 = vmatpush3.msra.mxu1 %v3261_v46  ;;  %2842 = vmatprep.mubr.f32.mxu0 %v3238_v23 }
 0x1ff   :  { %2829 = vmatmul.mubr.f32.gmra.mxu1 %v1458_v49  ;;  %2849 = vmatprep.subr.mxu1 %v3245_v33 }
 0x200   :  { %2850 = vmatpush3.msra.mxu1 %v3245_v33  ;;  %2843 = vmatmul.mubr.f32.gmra.mxu0 %v3243_v53 }
 0x201   :  { %2851 = vmatprep.subr.mxu1 %v3251_v39  ;;  %2853 = vmatprep.mubr.f32.mxu1 %v3214_v29 }
 0x202   :  { %2852 = vmatpush3.msra.mxu1 %v3251_v39  ;;  %2859 = vmatprep.subr.mxu0 %v2954_v30 }
 0x203   :  { %2854 = vmatmul.mubr.f32.vlgmr.msra.gmra.mxu1 %v3231_v10  ;;  %2870 = vmatprep.subr.mxu1 %v2954_v30  ;;  %v1343_v10 = vpop.permute.xlu0 %1342 }
 0x204   :  { %2856 = vmatprep.mubr.f32.mxu1 %v3238_v23  ;;  %2867 = vmatprep.mubr.msk.f32.mxu0 %vm2955_vm3, %v2954_v30 }
 0x207   :  { %2857 = vmatmul.mubr.f32.gmra.mxu1 %v3243_v53  ;;  %v1333_v16 = vpop.permute.xlu0 %1332 }
 0x208   :  { %2878 = vmatprep.mubr.msk.f32.mxu1 %vm2955_vm3, %v2954_v30 }
 0x2a5   :  { %v2785_v29 = vpop.f32.mrf.mxu0 }
 0x2a6   :  { %v1443_v17 = vadd.f32 %v2785_v29, %v1333_v16 }
 0x2a7   :  { %v1432_v51 = vpop.f32.mrf.mxu0 }
 0x2a8   :  { %v1433_v20 = vadd.f32 %v1432_v51, %v1328_v19 }
 0x2aa   :  { %v2788_v7 = vpop.f32.mrf.mxu0 }
 0x2ab   :  { %v1463_v23 = vadd.f32 %v2788_v7, %v1343_v10  ;;  %v2057_v7 = vsub.f32 %v3335_v56, %v2056_v2 }
 0x2ac   :  { %v1452_v8 = vpop.f32.mrf.mxu0 }
 0x2ad   :  { %v1453_v52 = vadd.f32 %v1452_v8, %v1338_v13 }
 0x2ae   :  { %v2799_v9 = vpop.f32.mrf.mxu1 }
 0x2af   :  { %v1560_v21 = vadd.f32 %v2799_v9, %v1443_v17 }
 0x2b0   :  { %v1553_v11 = vpop.f32.mrf.mxu1  ;;  %v2813_v12 = vpop.f32.mrf.mxu0 }
 0x2b1   :  { %v1554_v24 = vadd.f32 %v1553_v11, %v1433_v20  ;;  %v1659_v53 = vadd.f32 %v2813_v12, %v1560_v21 }
 0x2b2   :  { %v1651_v15 = vpop.f32.mrf.mxu0 }
 0x2b3   :  { %v1652_v33 = vadd.f32 %v1651_v15, %v1554_v24 }
 0x2b4   :  { %v2802_v14 = vpop.f32.mrf.mxu1 }
 0x2b5   :  { %v1572_v28 = vadd.f32 %v2802_v14, %v1463_v23  ;;  %v2058_v14 = vand.u32 4294901760, %v2057_v7 }
 0x2b6   :  { %v1565_v18 = vpop.f32.mrf.mxu1 }
 0x2b7   :  { %v1566_v34 = vadd.f32 %v1565_v18, %v1453_v52 }
 0x2b8   :  { %v2816_v22 = vpop.f32.mrf.mxu0 }
 0x2b9   :  { %v1673_v39 = vadd.f32 %v2816_v22, %v1572_v28  ;;  %v1980_v28 = vpop.permute.xlu0 %1979 }
 0x2ba   :  { %v1665_v25 = vpop.f32.mrf.mxu0  ;;  %v2827_v26 = vpop.f32.mrf.mxu1 }
 0x2bb   :  { %v1758_v35 = vadd.f32 %v2827_v26, %v1659_v53  ;;  %v1666_v44 = vadd.f32 %v1665_v25, %v1566_v34 }
 0x2bc   :  { %v1749_v31 = vpop.f32.mrf.mxu1  ;;  %v2841_v32 = vpop.f32.mrf.mxu0 }
 0x2bd   :  { %v1750_v40 = vadd.f32 %v1749_v31, %v1652_v33  ;;  %v1863_v45 = vadd.f32 %v2841_v32, %v1758_v35 }
 0x2be   :  { %v1856_v36 = vpop.f32.mrf.mxu0 }
 0x2bf   :  { %v2830_v38 = vpop.f32.mrf.mxu1  ;;  %v1857_v48 = vadd.f32 %v1856_v36, %v1750_v40 }
 0x2c0   :  { %v2844_v42 = vpop.f32.mrf.mxu0  ;;  %v1774_v46 = vadd.f32 %v2830_v38, %v1673_v39 }
 0x2c1   :  { %v1765_v41 = vpop.f32.mrf.mxu1 }
 0x2c2   :  { %v1766_v49 = vadd.f32 %v1765_v41, %v1666_v44  ;;  %v1868_v54 = vpop.f32.mrf.mxu0  ;;  %v1875_v57 = vadd.f32 %v2844_v42, %v1774_v46 }
 0x2c3   :  { %v2855_v47 = vpop.f32.mrf.mxu1 }
 0x2c4   :  { %v1956_v50 = vadd.f32 %v2855_v47, %v1863_v45  ;;  %v1869_v61 = vadd.f32 %v1868_v54, %v1766_v49 }
 0x2c5   :  { %v1949_v55 = vpop.f32.mrf.mxu1 }
 0x2c6   :  { %v1972_v58 = vmax.f32 %v1956_v50, 0.0  ;;  %v1950_v59 = vadd.f32 %v1949_v55, %v1857_v48 }
 0x2c7   :  { %v2858_v60 = vpop.f32.mrf.mxu1 }
 0x2c8   :  { %v3337_v62 = vand.u32 4294901760, %v1972_v58  ;;  %v1971_v63 = vmax.f32 %v1950_v59, 0.0  ;;  %v1968_v0 = vadd.f32 %v2858_v60, %v1875_v57 }
 0x2c9   :  { %v1961_v1 = vpop.f32.mrf.mxu1 }
 0x2ca   :  { %v3340_v3 = vand.u32 4294901760, %v1971_v63  ;;  %v1974_v4 = vmax.f32 %v1968_v0, 0.0  ;;  %v1962_v5 = vadd.f32 %v1961_v1, %v1869_v61  ;;  %v2104_v6 = vsub.f32 %v1972_v58, %v3337_v62 }
 0x2cc   :  { %v3343_v29 = vand.u32 4294901760, %v1974_v4  ;;  %v1973_v51 = vmax.f32 %v1962_v5, 0.0  ;;  %v2111_v8 = vsub.f32 %v1971_v63, %v3340_v3  ;;  %v2105_v11 = vand.u32 4294901760, %v2104_v6 }
 0x2ce   :  { %v2090_v9 = vsub.f32 %v1974_v4, %v3343_v29  ;;  %v3350_v10 = vand.u32 4294901760, %v1973_v51  ;;  %2860 = vmatpush3.msra.mxu0 %v3343_v29  ;;  %v2112_v15 = vand.u32 4294901760, %v2111_v8  ;;  %v2106_v18 = vsub.f32 %v2104_v6, %v2105_v11 }
 0x2cf   :  { %2861 = vmatprep.subr.mxu0 %v2954_v30 }
 0x2d0   :  { %v2091_v12 = vand.u32 4294901760, %v2090_v9  ;;  %v2097_v13 = vsub.f32 %v1973_v51, %v3350_v10  ;;  %2862 = vmatpush3.msra.mxu0 %v3350_v10  ;;  %v2113_v21 = vsub.f32 %v2111_v8, %v2112_v15  ;;  %v2107_v23 = vand.u32 4294901760, %v2106_v18 }
 0x2d1   :  { %2863 = vmatprep.subr.mxu0 %v2954_v30 }
 0x2d2   :  { %v2092_v16 = vsub.f32 %v2090_v9, %v2091_v12  ;;  %v2098_v17 = vand.u32 4294901760, %v2097_v13  ;;  %2864 = vmatpush3.msra.mxu0 %v3337_v62  ;;  %v2114_v24 = vand.u32 4294901760, %v2113_v21 }
 0x2d3   :  { %2865 = vmatprep.subr.mxu0 %v2954_v30 }
 0x2d4   :  { %v2099_v19 = vsub.f32 %v2097_v13, %v2098_v17  ;;  %2866 = vmatpush3.msra.mxu0 %v3340_v3  ;;  %v2093_v20 = vand.u32 4294901760, %v2092_v16 }
 0x2d5   :  { %2868 = vmatmul.mubr.f32.vlgmr.msra.gmra.mxu0 %v2058_v14  ;;  %2881 = vmatprep.subr.mxu0 %v2954_v30 }
 0x2d6   :  { %2871 = vmatpush3.msra.mxu1 %v2093_v20  ;;  %2882 = vmatpush3.msra.mxu0 %v2090_v9  ;;  %v2100_v22 = vand.u32 4294901760, %v2099_v19 }
 0x2d7   :  { %2872 = vmatprep.subr.mxu1 %v2954_v30  ;;  %2883 = vmatprep.subr.mxu0 %v2954_v30 }
 0x2d8   :  { %2873 = vmatpush3.msra.mxu1 %v2100_v22  ;;  %2884 = vmatpush3.msra.mxu0 %v2097_v13 }
 0x2d9   :  { %2874 = vmatprep.subr.mxu1 %v2954_v30  ;;  %2885 = vmatprep.subr.mxu0 %v2954_v30 }
 0x2da   :  { %2875 = vmatpush3.msra.mxu1 %v2107_v23  ;;  %2886 = vmatpush3.msra.mxu0 %v2104_v6 }
 0x2db   :  { %2876 = vmatprep.subr.mxu1 %v2954_v30  ;;  %2887 = vmatprep.subr.mxu0 %v2954_v30 }
 0x2dc   :  { %2877 = vmatpush3.msra.mxu1 %v2114_v24  ;;  %2888 = vmatpush3.msra.mxu0 %v2111_v8 }
 0x2dd   :  { %2879 = vmatmul.mubr.f32.vlgmr.msra.gmra.mxu1 %v3332_v43  ;;  %2889 = vmatprep.mubr.msk.f32.mxu0 %vm2955_vm3, %v2954_v30 }
 0x2de   :  { %2892 = vmatprep.subr.mxu1 %v2954_v30  ;;  %2903 = vmatprep.subr.mxu0 %v2954_v30 }
 0x2df   :  { %2890 = vmatmul.mubr.f32.vlgmr.msra.gmra.mxu0 %v3335_v56  ;;  %2893 = vmatpush3.msra.mxu1 %v3343_v29 }
 0x2e0   :  { %2904 = vmatpush3.msra.mxu0 %v2091_v12  ;;  %2894 = vmatprep.subr.mxu1 %v2954_v30 }
 0x2e1   :  { %2905 = vmatprep.subr.mxu0 %v2954_v30  ;;  %2895 = vmatpush3.msra.mxu1 %v3350_v10 }
 0x2e2   :  { %2906 = vmatpush3.msra.mxu0 %v2098_v17  ;;  %2896 = vmatprep.subr.mxu1 %v2954_v30 }
 0x2e3   :  { %2907 = vmatprep.subr.mxu0 %v2954_v30  ;;  %2897 = vmatpush3.msra.mxu1 %v3337_v62 }
 0x2e4   :  { %2908 = vmatpush3.msra.mxu0 %v2105_v11  ;;  %2898 = vmatprep.subr.mxu1 %v2954_v30 }
 0x2e5   :  { %2909 = vmatprep.subr.mxu0 %v2954_v30  ;;  %2899 = vmatpush3.msra.mxu1 %v3340_v3 }
 0x2e6   :  { %2900 = vmatprep.mubr.msk.f32.mxu1 %vm2955_vm3, %v2954_v30  ;;  %2910 = vmatpush3.msra.mxu0 %v2112_v15 }
 0x2e7   :  { %2901 = vmatmul.mubr.f32.vlgmr.msra.gmra.mxu1 %v2056_v2  ;;  %2914 = vmatprep.subr.mxu1 %v2954_v30 }
 0x2e8   :  { %2911 = vmatprep.mubr.msk.f32.mxu0 %vm2955_vm3, %v2954_v30  ;;  %2915 = vmatpush3.msra.mxu1 %v3343_v29 }
 0x2e9   :  { %2912 = vmatmul.mubr.f32.vlgmr.msra.gmra.mxu0 %v3332_v43  ;;  %2916 = vmatprep.subr.mxu1 %v2954_v30 }
 0x2ea   :  { %2917 = vmatpush3.msra.mxu1 %v3350_v10  ;;  %2922 = vmatprep.mubr.msk.f32.mxu1 %vm2955_vm3, %v2954_v30 }
 0x2eb   :  { %2918 = vmatprep.subr.mxu1 %v2954_v30 }
 0x2ec   :  { %2919 = vmatpush3.msra.mxu1 %v3337_v62 }
 0x2ed   :  { %2920 = vmatprep.subr.mxu1 %v2954_v30 }
 0x2ee   :  { %2921 = vmatpush3.msra.mxu1 %v3340_v3 }
 0x2ef   :  { %2923 = vmatmul.mubr.f32.vlgmr.msra.gmra.mxu1 %v3332_v43 }
 0x395   :  { %v2060_v25 = vpop.f32.mrf.mxu0 }
 0x396   :  { %v2061_v32 = vadd.f32 %v2060_v25, %v1980_v28 }
 0x397   :  { %v2869_v26 = vpop.f32.mrf.mxu0 }
 0x39d   :  { %v2151_v27 = vpop.f32.mrf.mxu1 }
 0x39e   :  { %v2152_v33 = vadd.f32 %v2151_v27, %v2061_v32 }
 0x39f   :  { %v2880_v52 = vpop.f32.mrf.mxu1  ;;  %v2231_v53 = vpop.f32.mrf.mxu0 }
 0x3a0   :  { %v2232_v35 = vadd.f32 %v2231_v53, %v2152_v33 }
 0x3a1   :  { %v2891_v31 = vpop.f32.mrf.mxu0 }
 0x3a7   :  { %v2308_v34 = vpop.f32.mrf.mxu1 }
 0x3a8   :  { %v2309_v38 = vadd.f32 %v2308_v34, %v2232_v35 }
 0x3a9   :  { %v2902_v36 = vpop.f32.mrf.mxu1  ;;  %v2391_v37 = vpop.f32.mrf.mxu0 }
 0x3aa   :  { %v2392_v30 = vadd.f32 %v2391_v37, %v2309_v38 }
 0x3ab   :  { %v2913_v39 = vpop.f32.mrf.mxu0 }
 0x3af   :  { %v2466_v40 = vpop.f32.mrf.mxu1 }
 0x3b0   :  { %v2467_v41 = vadd.f32 %v2466_v40, %v2392_v30 }
 0x3b1   :  { %v2924_v42 = vpop.f32.mrf.mxu1 }
 0x3b2   :  { %v2470_v43 = vmax.f32 %v2467_v41, 0.0 }
 0x3b4   :  { %2472 = vst.msk [vmem:[#allocation2] sm:$0xf] %vm2471_vm4, %v2470_v43 }
 0x3b5   :  { %2942 = shalt.err (!%p2939_p4)
}
 0x3b6   :  { %2482 = dma.vmem_to_hbm [thread:$0]  %s2480_s10, 64, %s3413_s9, [#allocation3]  }
 0x3b7   :  { %2951 = dma.done.wait [#allocation3], 64  }
 0x3b8   :  { %2952 = vsyncadd [#allocation3], 4294967232 }
 0x3b9   :  { %2486 = vsyncpa [#allocation3], 1 }

</bundles_post_ra>
